<compile_context>
chip_gen: v7x
topology: tpu7x:2x2x1
jax: 0.10.0
libtpu: 0.0.40
codegen_flags: <defaults>
</compile_context>

<pallas_src>
import jax
import jax.numpy as jnp
from jax.experimental import pallas as pl
from jax.experimental.pallas import tpu as pltpu

NUM_CLASSES = 16
HIDDEN = 128           # per-modality projection width (module hardcodes 128)
OUT_PAD = 128          # lane-dense padded classifier width
K_TEXT = 8 * 32        # flattened text input features  (seq * emb)  = 256
K_IMAGE = 4 * 16 * 16  # flattened image input features (C * H * W)  = 1024


def _round_up(x, m):
    return ((x + m - 1) // m) * m


# ----------------------------- Pallas kernel ------------------------------- #
def _fused_head_kernel(xt_ref, xi_ref,
                       wt_ref, bt_ref,
                       wi_ref, bi_ref,
                       wct_ref, wci_ref, bc_ref,
                       out_ref):
    # text path: (folded backbone + proj Linear), f32 acc + f32 bias + ReLU
    text_feat = jnp.maximum(
        jnp.dot(xt_ref[...], wt_ref[...], preferred_element_type=jnp.float32)
        + bt_ref[...], 0.0)                                    # (tile_b, 128) f32
    # image path: (folded backbone + proj Linear), f32 acc + f32 bias + ReLU
    image_feat = jnp.maximum(
        jnp.dot(xi_ref[...], wi_ref[...], preferred_element_type=jnp.float32)
        + bi_ref[...], 0.0)                                    # (tile_b, 128) f32
    # classifier on the "concat": split-weight form — two K=128 MXU calls
    # summed into the same f32 accumulator (no (tile_b,256) concat buffer).
    logits = (jnp.dot(text_feat.astype(wct_ref.dtype), wct_ref[...],
                      preferred_element_type=jnp.float32)
              + jnp.dot(image_feat.astype(wci_ref.dtype), wci_ref[...],
                        preferred_element_type=jnp.float32)
              + bc_ref[...])                                   # (tile_b, 128) f32
    out_ref[...] = logits.astype(out_ref.dtype)                # bf16 store


# ------------------------------- wrapper ----------------------------------- #
def fused_multimodal_head(x_text, x_image, params, tile_b=1024):
    """x_text: (B, K_TEXT) bf16, x_image: (B, K_IMAGE) bf16 -> (B, NUM_CLASSES) f32."""
    B = x_text.shape[0]
    kt = x_text.shape[1]
    ki = x_image.shape[1]

    # Batch tile: multiple of 8 (sublane).  Cap at ~ceil(B/2) so large batches
    # produce >= 2 grid steps (keeps both v7x TensorCores busy).  No
    # whole-array padding: grid = cdiv(B, tile_b); the last partial tile's
    # out-of-bounds rows are row-independent garbage whose output rows are
    # masked on writeback and sliced off below.
    half_b = _round_up(pl.cdiv(B, 2), 8)
    tile_b = max(8, min(tile_b, half_b))
    grid = (pl.cdiv(B, tile_b),)

    wt, bt = params["wt_fused"], params["bt_pad"]       # (K_TEXT,128) bf16, (1,128) f32
    wi, bi = params["wi_fused"], params["bi_pad"]       # (K_IMAGE,128) bf16, (1,128) f32
    wct, wci = params["wc_text"], params["wc_image"]    # (128,128) bf16 each
    bc = params["bc_pad"]                                # (1,128) f32

    flops = 2 * B * (kt * HIDDEN + ki * HIDDEN + 2 * HIDDEN * OUT_PAD)
    bytes_accessed = (
        2 * B * (kt + ki + OUT_PAD)                             # bf16 activations in/out
        + 2 * (kt * HIDDEN + ki * HIDDEN + 2 * HIDDEN * OUT_PAD)  # bf16 weights
        + 4 * (2 * HIDDEN + OUT_PAD))                           # f32 biases

    # Weights / biases: constant index_map -> VMEM-resident, single-buffered.
    resident = dict(pipeline_mode=pl.Buffered(1))

    out_padded = pl.pallas_call(
        _fused_head_kernel,
        out_shape=jax.ShapeDtypeStruct((B, OUT_PAD), jnp.bfloat16),
        grid_spec=pltpu.PrefetchScalarGridSpec(
            num_scalar_prefetch=0,
            grid=grid,
            in_specs=[
                # batch-tiled activations (double-buffered across the grid)
                pl.BlockSpec((tile_b, kt), lambda i: (i, 0)),
                pl.BlockSpec((tile_b, ki), lambda i: (i, 0)),
                # resident weights / biases
                pl.BlockSpec((kt, HIDDEN), lambda i: (0, 0), **resident),
                pl.BlockSpec((1, HIDDEN), lambda i: (0, 0), **resident),
                pl.BlockSpec((ki, HIDDEN), lambda i: (0, 0), **resident),
                pl.BlockSpec((1, HIDDEN), lambda i: (0, 0), **resident),
                pl.BlockSpec((HIDDEN, OUT_PAD), lambda i: (0, 0), **resident),
                pl.BlockSpec((HIDDEN, OUT_PAD), lambda i: (0, 0), **resident),
                pl.BlockSpec((1, OUT_PAD), lambda i: (0, 0), **resident),
            ],
            out_specs=pl.BlockSpec((tile_b, OUT_PAD), lambda i: (i, 0)),
        ),
        compiler_params=pltpu.CompilerParams(
            dimension_semantics=("parallel",),
            vmem_limit_bytes=48 << 20),
        cost_estimate=pl.CostEstimate(
            flops=int(flops), transcendentals=0,
            bytes_accessed=int(bytes_accessed)),
    )(x_text, x_image, wt, bt, wi, bi, wct, wci, bc)

    # slice off the zero-padded classifier lanes; return f32 logits
    return out_padded[:B, :NUM_CLASSES].astype(jnp.float32)


# ------------------------- deterministic parameters ------------------------ #
def init_params(key):
    ks = jax.random.split(key, 8)
    scale = 0.02
    # original (unfused) module parameters, kept in f32 for the reference ----
    wt = scale * jax.random.normal(ks[0], (NUM_CLASSES, HIDDEN), jnp.float32)
    bt = scale * jax.random.normal(ks[1], (1, HIDDEN), jnp.float32)
    wi = scale * jax.random.normal(ks[2], (NUM_CLASSES, HIDDEN), jnp.float32)
    bi = scale * jax.random.normal(ks[3], (1, HIDDEN), jnp.float32)
    wc = scale * jax.random.normal(ks[4], (2 * HIDDEN, NUM_CLASSES), jnp.float32)
    bc = scale * jax.random.normal(ks[5], (1, NUM_CLASSES), jnp.float32)
    # frozen backbone stand-ins (linear maps flattened input -> num_classes)
    # TODO(synk): real text_model / image_model are arbitrary frozen nn.Modules;
    # modeled here as deterministic linear stand-ins so they can be folded.
    tb_w = scale * jax.random.normal(ks[6], (K_TEXT, NUM_CLASSES), jnp.float32)
    ib_w = scale * jax.random.normal(ks[7], (K_IMAGE, NUM_CLASSES), jnp.float32)

    # precomputed fused / padded kernel parameters (bf16 weights, f32 biases) -
    wt_fused = (tb_w @ wt).astype(jnp.bfloat16)            # (K_TEXT, 128)
    wi_fused = (ib_w @ wi).astype(jnp.bfloat16)            # (K_IMAGE, 128)
    wc_text = jnp.zeros((HIDDEN, OUT_PAD), jnp.float32
                        ).at[:, :NUM_CLASSES].set(wc[:HIDDEN]).astype(jnp.bfloat16)
    wc_image = jnp.zeros((HIDDEN, OUT_PAD), jnp.float32
                         ).at[:, :NUM_CLASSES].set(wc[HIDDEN:]).astype(jnp.bfloat16)
    bc_pad = jnp.zeros((1, OUT_PAD), jnp.float32).at[:, :NUM_CLASSES].set(bc)

    return {
        # unfused (reference) form
        "wt": wt, "bt": bt, "wi": wi, "bi": bi, "wc": wc, "bc": bc,
        "text_backbone_w": tb_w, "image_backbone_w": ib_w,
        # fused / padded (kernel) form
        "wt_fused": wt_fused, "bt_pad": bt,
        "wi_fused": wi_fused, "bi_pad": bi,
        "wc_text": wc_text, "wc_image": wc_image, "bc_pad": bc_pad,
    }


# --------------------------------- forward --------------------------------- #
def multimodal_classifier_forward(text_input, image_input, params):
    """Full forward: flatten inputs, run the single fused Pallas kernel.

    Inputs are expected already in bf16 (cast at the producer / dataloader);
    the astype below is a no-op in that case.
    """
    B = text_input.shape[0]
    x_text = jnp.reshape(text_input, (B, -1)).astype(jnp.bfloat16)    # (B, 256)
    x_image = jnp.reshape(image_input, (B, -1)).astype(jnp.bfloat16)  # (B, 1024)
    return fused_multimodal_head(x_text, x_image, params)


# ------------------------------ reference check ---------------------------- #
def reference_forward(text_input, image_input, params):
    """Unfused plain-JAX f32 reference mirroring the PyTorch module (eval mode)."""
    B = text_input.shape[0]
    text_logits = jnp.reshape(text_input, (B, -1)) @ params["text_backbone_w"]
    image_logits = jnp.reshape(image_input, (B, -1)) @ params["image_backbone_w"]
    tf = jnp.maximum(text_logits @ params["wt"] + params["bt"], 0.0)
    imf = jnp.maximum(image_logits @ params["wi"] + params["bi"], 0.0)
    combined = jnp.concatenate([tf, imf], axis=1)
    return combined @ params["wc"] + params["bc"]


if __name__ == "__main__":
    key = jax.random.PRNGKey(0)
    k_params, k_text, k_image = jax.random.split(key, 3)

    params = init_params(k_params)

    # small deterministic inputs: text (B, seq, emb), image NCHW (B, C, H, W)
    text_input = jax.random.normal(k_text, (2, 8, 32), jnp.float32)
    image_input = jax.random.normal(k_image, (2, 4, 16, 16), jnp.float32)

    # producer-side bf16 cast (in production this is the dataloader / backbone
    # output, so the kernel streams bf16 without an extra wrapper-side pass)
    out = multimodal_classifier_forward(text_input.astype(jnp.bfloat16),
                                        image_input.astype(jnp.bfloat16),
                                        params)
    out = jax.block_until_ready(out)

    ref = reference_forward(text_input, image_input, params)
    assert out.shape == (2, NUM_CLASSES)
    # bf16 streaming -> relaxed tolerance vs the f32 reference
    assert jnp.allclose(out, ref, atol=1e-2, rtol=1e-2), "mismatch vs reference"

    print("KERNEL_OK")
</pallas_src>

<mosaic_0001>
module attributes {stable_mosaic.version = 11 : i64} {
  func.func @_fused_head_kernel(%arg0: i32, %arg1: memref<8x256xbf16, #tpu.memory_space<vmem>>, %arg2: memref<8x1024xbf16, #tpu.memory_space<vmem>>, %arg3: memref<256x128xbf16, #tpu.memory_space<vmem>>, %arg4: memref<1x128xf32, #tpu.memory_space<vmem>>, %arg5: memref<1024x128xbf16, #tpu.memory_space<vmem>>, %arg6: memref<1x128xf32, #tpu.memory_space<vmem>>, %arg7: memref<128x128xbf16, #tpu.memory_space<vmem>>, %arg8: memref<128x128xbf16, #tpu.memory_space<vmem>>, %arg9: memref<1x128xf32, #tpu.memory_space<vmem>>, %arg10: memref<8x128xbf16, #tpu.memory_space<vmem>>) attributes {dimension_semantics = [#tpu.dimension_semantics<parallel>], iteration_bounds = array<i64: 1>, scalar_prefetch = 0 : i64, scratch_operands = 0 : i64, tpu.core_type = #tpu.core_type<tc>, window_params = [{transform_indices = @transform_0, window_bounds = array<i64: 8, 256>}, {transform_indices = @transform_1, window_bounds = array<i64: 8, 1024>}, {pipeline_mode = #tpu.pipeline_mode<synchronous>, transform_indices = @transform_2, window_bounds = array<i64: 256, 128>}, {pipeline_mode = #tpu.pipeline_mode<synchronous>, transform_indices = @transform_3, window_bounds = array<i64: 1, 128>}, {pipeline_mode = #tpu.pipeline_mode<synchronous>, transform_indices = @transform_4, window_bounds = array<i64: 1024, 128>}, {pipeline_mode = #tpu.pipeline_mode<synchronous>, transform_indices = @transform_5, window_bounds = array<i64: 1, 128>}, {pipeline_mode = #tpu.pipeline_mode<synchronous>, transform_indices = @transform_6, window_bounds = array<i64: 128, 128>}, {pipeline_mode = #tpu.pipeline_mode<synchronous>, transform_indices = @transform_7, window_bounds = array<i64: 128, 128>}, {pipeline_mode = #tpu.pipeline_mode<synchronous>, transform_indices = @transform_8, window_bounds = array<i64: 1, 128>}, {transform_indices = @transform_9, window_bounds = array<i64: 8, 128>}]} {
    %c0 = arith.constant 0 : index
    %c0_0 = arith.constant 0 : index
    %0 = vector.load %arg1[%c0, %c0_0] : memref<8x256xbf16, #tpu.memory_space<vmem>>, vector<8x256xbf16>
    %c0_1 = arith.constant 0 : index
    %c0_2 = arith.constant 0 : index
    %1 = vector.load %arg3[%c0_1, %c0_2] : memref<256x128xbf16, #tpu.memory_space<vmem>>, vector<256x128xbf16>
    %cst = arith.constant dense<0.000000e+00> : vector<8x128xf32>
    %2 = tpu.matmul %0, %1, %cst {dimension_numbers = #tpu.dot_dimension_numbers<[1], [0], [0], [1], [0, 0, 1, 1], [], []>} : vector<8x256xbf16>, vector<256x128xbf16>, vector<8x128xf32> -> vector<8x128xf32>
    %c0_3 = arith.constant 0 : index
    %c0_4 = arith.constant 0 : index
    %3 = vector.load %arg4[%c0_3, %c0_4] : memref<1x128xf32, #tpu.memory_space<vmem>>, vector<1x128xf32>
    %4 = vector.broadcast %3 : vector<1x128xf32> to vector<8x128xf32>
    %5 = arith.addf %2, %4 : vector<8x128xf32>
    %cst_5 = arith.constant 0.000000e+00 : f32
    %6 = vector.broadcast %cst_5 : f32 to vector<8x128xf32>
    %7 = arith.maximumf %5, %6 : vector<8x128xf32>
    %c0_6 = arith.constant 0 : index
    %c0_7 = arith.constant 0 : index
    %8 = vector.load %arg2[%c0_6, %c0_7] : memref<8x1024xbf16, #tpu.memory_space<vmem>>, vector<8x1024xbf16>
    %c0_8 = arith.constant 0 : index
    %c0_9 = arith.constant 0 : index
    %9 = vector.load %arg5[%c0_8, %c0_9] : memref<1024x128xbf16, #tpu.memory_space<vmem>>, vector<1024x128xbf16>
    %cst_10 = arith.constant dense<0.000000e+00> : vector<8x128xf32>
    %10 = tpu.matmul %8, %9, %cst_10 {dimension_numbers = #tpu.dot_dimension_numbers<[1], [0], [0], [1], [0, 0, 1, 1], [], []>} : vector<8x1024xbf16>, vector<1024x128xbf16>, vector<8x128xf32> -> vector<8x128xf32>
    %c0_11 = arith.constant 0 : index
    %c0_12 = arith.constant 0 : index
    %11 = vector.load %arg6[%c0_11, %c0_12] : memref<1x128xf32, #tpu.memory_space<vmem>>, vector<1x128xf32>
    %12 = vector.broadcast %11 : vector<1x128xf32> to vector<8x128xf32>
    %13 = arith.addf %10, %12 : vector<8x128xf32>
    %cst_13 = arith.constant 0.000000e+00 : f32
    %14 = vector.broadcast %cst_13 : f32 to vector<8x128xf32>
    %15 = arith.maximumf %13, %14 : vector<8x128xf32>
    %16 = arith.truncf %7 : vector<8x128xf32> to vector<8x128xbf16>
    %c0_14 = arith.constant 0 : index
    %c0_15 = arith.constant 0 : index
    %17 = vector.load %arg7[%c0_14, %c0_15] : memref<128x128xbf16, #tpu.memory_space<vmem>>, vector<128x128xbf16>
    %cst_16 = arith.constant dense<0.000000e+00> : vector<8x128xf32>
    %18 = tpu.matmul %16, %17, %cst_16 {dimension_numbers = #tpu.dot_dimension_numbers<[1], [0], [0], [1], [0, 0, 1, 1], [], []>} : vector<8x128xbf16>, vector<128x128xbf16>, vector<8x128xf32> -> vector<8x128xf32>
    %19 = arith.truncf %15 : vector<8x128xf32> to vector<8x128xbf16>
    %c0_17 = arith.constant 0 : index
    %c0_18 = arith.constant 0 : index
    %20 = vector.load %arg8[%c0_17, %c0_18] : memref<128x128xbf16, #tpu.memory_space<vmem>>, vector<128x128xbf16>
    %cst_19 = arith.constant dense<0.000000e+00> : vector<8x128xf32>
    %21 = tpu.matmul %19, %20, %cst_19 {dimension_numbers = #tpu.dot_dimension_numbers<[1], [0], [0], [1], [0, 0, 1, 1], [], []>} : vector<8x128xbf16>, vector<128x128xbf16>, vector<8x128xf32> -> vector<8x128xf32>
    %22 = arith.addf %18, %21 : vector<8x128xf32>
    %c0_20 = arith.constant 0 : index
    %c0_21 = arith.constant 0 : index
    %23 = vector.load %arg9[%c0_20, %c0_21] : memref<1x128xf32, #tpu.memory_space<vmem>>, vector<1x128xf32>
    %24 = vector.broadcast %23 : vector<1x128xf32> to vector<8x128xf32>
    %25 = arith.addf %22, %24 : vector<8x128xf32>
    %26 = arith.truncf %25 : vector<8x128xf32> to vector<8x128xbf16>
    %c0_22 = arith.constant 0 : index
    %c0_23 = arith.constant 0 : index
    %27 = vector.load %arg10[%c0_22, %c0_23] : memref<8x128xbf16, #tpu.memory_space<vmem>>, vector<8x128xbf16>
    tpu.vector_store %arg10[%c0_22, %c0_23], %26 {strides = array<i32>} : memref<8x128xbf16, #tpu.memory_space<vmem>>, vector<8x128xbf16>,
    return
  }
  func.func @transform_0(%arg0: i32) -> (i32, i32) {
    %c0_i32 = arith.constant 0 : i32
    %c0_i32_0 = arith.constant 0 : i32
    return %arg0, %c0_i32 : i32, i32
  }
  func.func @transform_1(%arg0: i32) -> (i32, i32) {
    %c0_i32 = arith.constant 0 : i32
    %c0_i32_0 = arith.constant 0 : i32
    return %arg0, %c0_i32 : i32, i32
  }
  func.func @transform_2(%arg0: i32) -> (i32, i32) {
    %c0_i32 = arith.constant 0 : i32
    %c0_i32_0 = arith.constant 0 : i32
    %c0_i32_1 = arith.constant 0 : i32
    return %c0_i32, %c0_i32_0 : i32, i32
  }
  func.func @transform_3(%arg0: i32) -> (i32, i32) {
    %c0_i32 = arith.constant 0 : i32
    %c0_i32_0 = arith.constant 0 : i32
    %c0_i32_1 = arith.constant 0 : i32
    return %c0_i32, %c0_i32_0 : i32, i32
  }
  func.func @transform_4(%arg0: i32) -> (i32, i32) {
    %c0_i32 = arith.constant 0 : i32
    %c0_i32_0 = arith.constant 0 : i32
    %c0_i32_1 = arith.constant 0 : i32
    return %c0_i32, %c0_i32_0 : i32, i32
  }
  func.func @transform_5(%arg0: i32) -> (i32, i32) {
    %c0_i32 = arith.constant 0 : i32
    %c0_i32_0 = arith.constant 0 : i32
    %c0_i32_1 = arith.constant 0 : i32
    return %c0_i32, %c0_i32_0 : i32, i32
  }
  func.func @transform_6(%arg0: i32) -> (i32, i32) {
    %c0_i32 = arith.constant 0 : i32
    %c0_i32_0 = arith.constant 0 : i32
    %c0_i32_1 = arith.constant 0 : i32
    return %c0_i32, %c0_i32_0 : i32, i32
  }
  func.func @transform_7(%arg0: i32) -> (i32, i32) {
    %c0_i32 = arith.constant 0 : i32
    %c0_i32_0 = arith.constant 0 : i32
    %c0_i32_1 = arith.constant 0 : i32
    return %c0_i32, %c0_i32_0 : i32, i32
  }
  func.func @transform_8(%arg0: i32) -> (i32, i32) {
    %c0_i32 = arith.constant 0 : i32
    %c0_i32_0 = arith.constant 0 : i32
    %c0_i32_1 = arith.constant 0 : i32
    return %c0_i32, %c0_i32_0 : i32, i32
  }
  func.func @transform_9(%arg0: i32) -> (i32, i32) {
    %c0_i32 = arith.constant 0 : i32
    %c0_i32_0 = arith.constant 0 : i32
    return %arg0, %c0_i32 : i32, i32
  }
}

</mosaic_0001>

<bundles_post_ra>
// kernel: tpu_custom_call.1
= control target key start
LH: loop header
LB: loop body
LE: loop exit
PB: predicated region body
PF: predicated region fallthrough
CT: control target
= control target key end

     0   :  { %14 = vsyncpa [#allocation3], 0  ;;  %s2149_s0 = inlined_call_operand.hbm [shape: bf16[2,256], index: 0, kind: input, shape index: {}]   ;;  %s2150_s1 = inlined_call_operand.hbm [shape: bf16[2,1024], index: 1, kind: input, shape index: {}]   ;;  %s2151_s2 = inlined_call_operand.hbm [shape: bf16[256,128], index: 2, kind: input, shape index: {}]   ;;  %s2152_s3 = inlined_call_operand.vmem [shape: f32[1,128], index: 3, kind: input, shape index: {}]   ;;  %s2153_s4 = inlined_call_operand.hbm [shape: bf16[1024,128], index: 4, kind: input, shape index: {}]   ;;  %s2154_s5 = inlined_call_operand.vmem [shape: f32[1,128], index: 5, kind: input, shape index: {}]   ;;  %s2155_s6 = inlined_call_operand.hbm [shape: bf16[128,128], index: 6, kind: input, shape index: {}]   ;;  %s2156_s7 = inlined_call_operand.hbm [shape: bf16[128,128], index: 7, kind: input, shape index: {}]   ;;  %s2157_s8 = inlined_call_operand.vmem [shape: f32[1,128], index: 8, kind: input, shape index: {}]   ;;  %s2158_s9 = inlined_call_operand.hbm [shape: bf16[2,128], index: 9, kind: output, shape index: {}]  }
   0x1   :  { %15 = vsyncpa [#allocation6], 0 }
   0x2   :  { %16 = vsyncpa [#allocation9], 0 }
   0x3   :  { %17 = vsyncpa [#allocation12], 0 }
   0x4   :  { %18 = vsyncpa [#allocation4], 0 }
   0x5   :  { %23 = vsyncadd [#allocation3], 96  ;;  %s1923_s30 = smov [#allocation2]   ;;  %s1759_s13 = scalar_lea.hbm %s2149_s0, 32 }
   0x6   :  { %s24_s10 = sshll.u32 %s1923_s30, 4  ;;  %p1760_p0 = scmp.ne.s32.totalorder %s2149_s0, %s1759_s13  ;;  %s25_s10 = int_to_ptr.vmem [resolvable:$true] %s24_s10 }
   0x7   :  { %p1763_p1 = scmp.lt.u32.totalorder %s1759_s13, %s2149_s0 }
   0x9   :  { %p1765_p2 = pnand %p1763_p1, %p1760_p0 }
   0xb   :  { %1768 = shalt.err (!%p1765_p2)
}
   0xc   :  { %s1769_s18 = scalar_lea.vmem %s25_s10, 32  ;;  %s1773_s19 = scalar_lea.vmem %s25_s10, 128 }
   0xd   :  { %p1770_p3 = scmp.ne.s32.totalorder %s25_s10, %s1769_s18  ;;  %p1774_p4 = scmp.lt.s32.totalorder %s25_s10, %s25_s10 }
   0xe   :  { %p1775_p5 = scmp.lt.s32.totalorder %s1773_s19, %s1769_s18 }
  0x10   :  { %p1776_p6 = por %p1775_p5, %p1774_p4 }
  0x12   :  { %p1777_p7 = pnand %p1776_p6, %p1770_p3 }
  0x14   :  { %1780 = shalt.err (!%p1777_p7)
}
  0x15   :  { %s1924_s20 = smov 32   ;;  %s1925_s21 = smov 2  }
  0x16   :  { %30 = dma.hbm_to_vmem [thread:$0]  %s2149_s0, 32, %s25_s10, [#allocation3], %s1924_s20, %s1924_s20, %s1925_s21  }
  0x17   :  { %35 = vsyncadd [#allocation6], 384  ;;  %s1926_s24 = smov [#allocation5]   ;;  %s1781_s28 = scalar_lea.hbm %s2150_s1, 128 }
  0x18   :  { %s36_s25 = sshll.u32 %s1926_s24, 4  ;;  %p1782_p8 = scmp.ne.s32.totalorder %s2150_s1, %s1781_s28  ;;  %s37_s25 = int_to_ptr.vmem [resolvable:$true] %s36_s25 }
  0x19   :  { %p1785_p9 = scmp.lt.u32.totalorder %s1781_s28, %s2150_s1 }
  0x1b   :  { %p1787_p10 = pnand %p1785_p9, %p1782_p8 }
  0x1d   :  { %1790 = shalt.err (!%p1787_p10)
}
  0x1e   :  { %s1791_s13 = scalar_lea.vmem %s37_s25, 128  ;;  %s1795_s0 = scalar_lea.vmem %s37_s25, 512 }
  0x1f   :  { %p1792_p11 = scmp.ne.s32.totalorder %s37_s25, %s1791_s13  ;;  %p1796_p12 = scmp.lt.s32.totalorder %s37_s25, %s37_s25 }
  0x20   :  { %p1797_p13 = scmp.lt.s32.totalorder %s1795_s0, %s1791_s13 }
  0x22   :  { %p1798_p0 = por %p1797_p13, %p1796_p12 }
  0x24   :  { %p1799_p1 = pnand %p1798_p0, %p1792_p11 }
  0x26   :  { %1802 = shalt.err (!%p1799_p1)
}
  0x27   :  { %s1927_s10 = smov 128   ;;  %s1928_s14 = smov 8  }
  0x28   :  { %42 = dma.hbm_to_vmem [thread:$0]  %s2150_s1, 128, %s37_s25, [#allocation6], %s1927_s10, %s1927_s10, %s1928_s14  }
  0x29   :  { %s1929_s17 = smov [#allocation8]   ;;  %s1930_s19 = smov [#allocation7]  }
  0x2a   :  { %s62_s18 = sshll.u32 %s1929_s17, 4  ;;  %s48_s20 = sshll.u32 %s1930_s19, 4  ;;  %s63_s18 = int_to_ptr.vmem [resolvable:$true] %s62_s18  ;;  %s49_s20 = int_to_ptr.vmem [resolvable:$true] %s48_s20 }
  0x2b   :  { %s1803_s23 = scalar_lea.hbm %s2153_s4, 8192 }
  0x2c   :  { %p1804_p2 = scmp.ne.s32.totalorder %s2153_s4, %s1803_s23  ;;  %p1807_p3 = scmp.lt.u32.totalorder %s1803_s23, %s2153_s4 }
  0x2e   :  { %p1809_p4 = pnand %p1807_p3, %p1804_p2 }
  0x30   :  { %1812 = shalt.err (!%p1809_p4)
}
  0x31   :  { %s1813_s1 = scalar_lea.vmem %s63_s18, 8192  ;;  %p1818_p6 = scmp.lt.s32.totalorder %s63_s18, %s63_s18 }
  0x32   :  { %p1814_p5 = scmp.ne.s32.totalorder %s63_s18, %s1813_s1  ;;  %p1819_p7 = scmp.lt.s32.totalorder %s1813_s1, %s1813_s1 }
  0x34   :  { %p1820_p8 = por %p1819_p7, %p1818_p6 }
  0x36   :  { %p1821_p9 = pnand %p1820_p8, %p1814_p5 }
  0x38   :  { %1824 = shalt.err (!%p1821_p9)
}
  0x39   :  { %s1931_s25 = smov 64   ;;  %s1932_s29 = smov 4  }
  0x3a   :  { %68 = dma.hbm_to_vmem [thread:$0]  %s2153_s4, 8192, %s63_s18, [#allocation9], %s1931_s25, %s1931_s25, %s1932_s29  }
  0x3b   :  { %s1825_s0 = scalar_lea.hbm %s2151_s2, 2048 }
  0x3c   :  { %p1826_p10 = scmp.ne.s32.totalorder %s2151_s2, %s1825_s0  ;;  %p1829_p11 = scmp.lt.u32.totalorder %s1825_s0, %s2151_s2 }
  0x3e   :  { %p1831_p12 = pnand %p1829_p11, %p1826_p10 }
  0x40   :  { %1834 = shalt.err (!%p1831_p12)
}
  0x41   :  { %s1835_s17 = scalar_lea.vmem %s49_s20, 2048  ;;  %p1840_p0 = scmp.lt.s32.totalorder %s49_s20, %s49_s20 }
  0x42   :  { %p1836_p13 = scmp.ne.s32.totalorder %s49_s20, %s1835_s17  ;;  %p1841_p1 = scmp.lt.s32.totalorder %s1835_s17, %s1835_s17 }
  0x44   :  { %p1842_p2 = por %p1841_p1, %p1840_p0 }
  0x46   :  { %p1843_p3 = pnand %p1842_p2, %p1836_p13 }
  0x48   :  { %1846 = shalt.err (!%p1843_p3)
}
  0x49   :  { %54 = dma.hbm_to_vmem [thread:$0]  %s2151_s2, 2048, %s49_s20, [#allocation6], %s1931_s25, %s1931_s25, %s1932_s29  }
  0x4a   :  { %s1933_s19 = smov [#allocation10]   ;;  %s1934_s22 = smov [#allocation11]  }
  0x4b   :  { %s76_s21 = sshll.u32 %s1933_s19, 4  ;;  %s88_s23 = sshll.u32 %s1934_s22, 4  ;;  %s77_s21 = int_to_ptr.vmem [resolvable:$true] %s76_s21  ;;  %s89_s23 = int_to_ptr.vmem [resolvable:$true] %s88_s23 }
  0x4c   :  { %s1847_s27 = scalar_lea.hbm %s2155_s6, 1024 }
  0x4d   :  { %p1848_p4 = scmp.ne.s32.totalorder %s2155_s6, %s1847_s27  ;;  %p1851_p5 = scmp.lt.u32.totalorder %s1847_s27, %s2155_s6 }
  0x4f   :  { %p1853_p6 = pnand %p1851_p5, %p1848_p4 }
  0x51   :  { %1856 = shalt.err (!%p1853_p6)
}
  0x52   :  { %s1857_s2 = scalar_lea.vmem %s77_s21, 1024  ;;  %p1862_p8 = scmp.lt.s32.totalorder %s77_s21, %s77_s21 }
  0x53   :  { %p1858_p7 = scmp.ne.s32.totalorder %s77_s21, %s1857_s2  ;;  %p1863_p9 = scmp.lt.s32.totalorder %s1857_s2, %s1857_s2 }
  0x55   :  { %p1864_p10 = por %p1863_p9, %p1862_p8 }
  0x57   :  { %p1865_p11 = pnand %p1864_p10, %p1858_p7 }
  0x59   :  { %1868 = shalt.err (!%p1865_p11)
}
  0x5a   :  { %82 = dma.hbm_to_vmem [thread:$0]  %s2155_s6, 1024, %s77_s21, [#allocation9], %s1931_s25, %s1931_s25, %s1932_s29  }
  0x5b   :  { %s1869_s10 = scalar_lea.hbm %s2156_s7, 1024 }
  0x5c   :  { %p1870_p12 = scmp.ne.s32.totalorder %s2156_s7, %s1869_s10  ;;  %p1873_p13 = scmp.lt.u32.totalorder %s1869_s10, %s2156_s7 }
  0x5e   :  { %p1875_p0 = pnand %p1873_p13, %p1870_p12 }
  0x60   :  { %1878 = shalt.err (!%p1875_p0)
}
  0x61   :  { %s1879_s4 = scalar_lea.vmem %s89_s23, 1024  ;;  %p1884_p2 = scmp.lt.s32.totalorder %s89_s23, %s89_s23 }
  0x62   :  { %p1880_p1 = scmp.ne.s32.totalorder %s89_s23, %s1879_s4  ;;  %p1885_p3 = scmp.lt.s32.totalorder %s1879_s4, %s1879_s4 }
  0x64   :  { %p1886_p4 = por %p1885_p3, %p1884_p2 }
  0x66   :  { %p1887_p5 = pnand %p1886_p4, %p1880_p1 }
  0x68   :  { %1890 = shalt.err (!%p1887_p5)
}
  0x69   :  { %94 = dma.hbm_to_vmem [thread:$0]  %s2156_s7, 1024, %s89_s23, [#allocation12], %s1931_s25, %s1931_s25, %s1932_s29  }
  0x6a   :  { %1913 = dma.done.wait [#allocation3], 128  }
  0x6b   :  { %1914 = vsyncadd [#allocation3], 4294967168 }
  0x6c   :  { %1915 = dma.done.wait [#allocation6], 2560  }
  0x6d   :  { %1916 = vsyncadd [#allocation6], 4294964736 }
  0x6e   :  { %1917 = dma.done.wait [#allocation9], 9216  }
  0x6f   :  { %1918 = vsyncadd [#allocation9], 4294958080 }
  0x70   :  { %1919 = dma.done.wait [#allocation12], 1024  }
  0x71   :  { %1920 = vsyncadd [#allocation12], 4294966272  ;;  %v1657_v0 = vld [vmem:[#allocation7 + $0x40] sm:$0xff]   ;;  %v1661_v4 = vld [vmem:[#allocation7 + $0x48] sm:$0xff]   ;;  %v1935_v23 = vmov 1966171168   ;;  %v168_v25 = vlaneseq }
  0x72   :  { %v1658_v1 = vld [vmem:[#allocation7] sm:$0xff]   ;;  %1471 = vmatprep.subr.bf16.mxu0 %v1657_v0  ;;  %v1662_v5 = vld [vmem:[#allocation7 + $0x8] sm:$0xff]   ;;  %v1665_v8 = vld [vmem:[#allocation7 + $0x50] sm:$0xff]   ;;  %v166_v24 = vunpack.c.l.s4 %v1935_v23  ;;  %vm1937_vm0 = vmmov 0  }
  0x73   :  { %v1659_v2 = vld [vmem:[#allocation8 + $0x40] sm:$0xff]   ;;  %1472 = vmatpush3.bf16.msra.mxu0 %v1658_v1  ;;  %v1663_v6 = vld [vmem:[#allocation8 + $0x48] sm:$0xff]   ;;  %v1666_v9 = vld [vmem:[#allocation7 + $0x10] sm:$0xff]   ;;  %v169_v31 = vshrl.u32 %v168_v25, 7 }
  0x74   :  { %v1660_v3 = vld [vmem:[#allocation8] sm:$0xff]   ;;  %1493 = vmatprep.subr.bf16.mxu1 %v1659_v2  ;;  %1473 = vmatprep.subr.bf16.mxu0 %v1661_v4  ;;  %v1664_v7 = vld [vmem:[#allocation8 + $0x8] sm:$0xff]   ;;  %v1667_v10 = vld [vmem:[#allocation8 + $0x50] sm:$0xff]   ;;  %v167_v30 = vunpack.c.0.s8 %v166_v24 }
  0x75   :  { %1494 = vmatpush3.bf16.msra.mxu1 %v1660_v3  ;;  %v1668_v11 = vld [vmem:[#allocation8 + $0x10] sm:$0xff]   ;;  %v1669_v12 = vld [vmem:[#allocation7 + $0x58] sm:$0xff]   ;;  %v1673_v16 = vld [vmem:[#allocation7 + $0x60] sm:$0xff]  }
  0x76   :  { %1495 = vmatprep.subr.bf16.mxu1 %v1663_v6  ;;  %v1670_v13 = vld [vmem:[#allocation7 + $0x18] sm:$0xff]   ;;  %v1674_v17 = vld [vmem:[#allocation7 + $0x20] sm:$0xff]   ;;  %v1677_v20 = vld [vmem:[#allocation7 + $0x68] sm:$0xff]   ;;  %v2075_v36 = vsub.s32 %v167_v30, %v169_v31 }
  0x77   :  { %1474 = vmatpush3.bf16.msra.mxu0 %v1662_v5  ;;  %v1671_v14 = vld [vmem:[#allocation8 + $0x58] sm:$0xff]   ;;  %v1675_v18 = vld [vmem:[#allocation8 + $0x60] sm:$0xff]   ;;  %v1678_v21 = vld [vmem:[#allocation7 + $0x28] sm:$0xff]  }
  0x78   :  { %1475 = vmatprep.subr.bf16.mxu0 %v1665_v8  ;;  %v1672_v15 = vld [vmem:[#allocation8 + $0x18] sm:$0xff]   ;;  %v1676_v19 = vld [vmem:[#allocation8 + $0x20] sm:$0xff]   ;;  %v1679_v22 = vld [vmem:[#allocation8 + $0x68] sm:$0xff]  }
  0x79   :  { %1496 = vmatpush3.bf16.msra.mxu1 %v1664_v7  ;;  %v1680_v26 = vld [vmem:[#allocation8 + $0x28] sm:$0xff]   ;;  %v1681_v27 = vld [vmem:[#allocation7 + $0x70] sm:$0xff]   ;;  %v1685_v33 = vld [vmem:[#allocation7 + $0x78] sm:$0xff]  }
  0x7a   :  { %1497 = vmatprep.subr.bf16.mxu1 %v1667_v10  ;;  %v1682_v28 = vld [vmem:[#allocation7 + $0x30] sm:$0xff]   ;;  %v1686_v34 = vld [vmem:[#allocation7 + $0x38] sm:$0xff]   ;;  %v1689_v45 = vld [vmem:[#allocation8 + $0xc0] sm:$0xff]  }
  0x7b   :  { %1476 = vmatpush3.bf16.msra.mxu0 %v1666_v9  ;;  %v1683_v29 = vld [vmem:[#allocation8 + $0x70] sm:$0xff]   ;;  %v1687_v35 = vld [vmem:[#allocation8 + $0x78] sm:$0xff]   ;;  %v1691_v47 = vld [vmem:[#allocation5] ss:$8 sps:$4 sm:$0xff]  }
  0x7c   :  { %1477 = vmatprep.subr.bf16.mxu0 %v1669_v12  ;;  %v1684_v32 = vld [vmem:[#allocation8 + $0x30] sm:$0xff]   ;;  %v116_v37 = vld [vmem:[#allocation2] sm:$0x3]  ;;  %v117_v38 = vld [vmem:[#allocation2 + $0x2] sm:$0x3]  ;;  %v487_v53 = vrot.slane %v1691_v47, %v2075_v36 }
  0x7d   :  { %1498 = vmatpush3.bf16.msra.mxu1 %v1668_v11  ;;  %v118_v39 = vld [vmem:[#allocation2 + $0x4] sm:$0x3]  ;;  %v119_v40 = vld [vmem:[#allocation2 + $0x6] sm:$0x3]  ;;  %v163_v41 = vcombine.low %v116_v37, %v117_v38  ;;  %v1693_v50 = vld [vmem:[#allocation5 + $0x4] ss:$8 sps:$4 sm:$0xff]  }
  0x7e   :  { %1499 = vmatprep.subr.bf16.mxu1 %v1671_v14  ;;  %v164_v42 = vcombine.low %v118_v39, %v119_v40  ;;  %v1688_v43 = vld [vmem:[#allocation8 + $0x38] sm:$0xff]   ;;  %v1697_v54 = vld [vmem:[#allocation8 + $0x140] sm:$0xff]   ;;  %v2084_v59 = vrot.slane %v1693_v50, %v2075_v36  ;;  %v1699_v60 = vld [vmem:[#allocation8 + $0xc8] sm:$0xff]  }
  0x7f   :  { %1478 = vmatpush3.bf16.msra.mxu0 %v1670_v13  ;;  %v171_v44 = vrot.slane %v163_v41, %v2075_v36  ;;  %v1694_v51 = vld [vmem:[#allocation5 + $0x10] ss:$8 sps:$4 sm:$0xff]   ;;  %v1696_v52 = vld [vmem:[#allocation5 + $0x14] ss:$8 sps:$4 sm:$0xff]   ;;  %v1690_v57 = vld [vmem:[#allocation8 + $0x80] sm:$0xff]  }
  0x80   :  { %1479 = vmatprep.subr.bf16.mxu0 %v1673_v16  ;;  %v178_v46 = vrot.slane %v164_v42, %v2075_v36  ;;  %v501_v58 = vrot.slane %v1694_v51, %v2075_v36  ;;  %v2087_v61 = vrot.slane %v1696_v52, %v2075_v36  ;;  %v1698_v0 = vld [vmem:[#allocation8 + $0x100] sm:$0xff]   ;;  %v1700_v1 = vld [vmem:[#allocation8 + $0x88] sm:$0xff]   ;;  %v1703_v6 = vld [vmem:[#allocation8 + $0xd0] sm:$0xff]  }
  0x81   :  { %1500 = vmatpush3.bf16.msra.mxu1 %v1672_v15  ;;  %v1701_v5 = vld [vmem:[#allocation8 + $0x148] sm:$0xff]   ;;  %v1704_v10 = vld [vmem:[#allocation8 + $0x90] sm:$0xff]   ;;  %v1707_v12 = vld [vmem:[#allocation8 + $0xd8] sm:$0xff]  }
  0x82   :  { %1501 = vmatprep.subr.bf16.mxu1 %v1675_v18  ;;  %v180_v48 = vcombine.high %v171_v44, %v178_v46  ;;  %v179_v49 = vcombine.low %v171_v44, %v178_v46  ;;  %v510_v62 = vcombine.high %v487_v53, %v501_v58  ;;  %v509_v63 = vcombine.low %v487_v53, %v501_v58  ;;  %v1702_v8 = vld [vmem:[#allocation8 + $0x108] sm:$0xff]   ;;  %v1705_v11 = vld [vmem:[#allocation8 + $0x150] sm:$0xff]   ;;  %v1708_v14 = vld [vmem:[#allocation8 + $0x98] sm:$0xff]  }
  0x83   :  { %1480 = vmatpush3.bf16.msra.mxu0 %v1674_v17  ;;  %v512_v2 = vcombine.high %v2084_v59, %v2087_v61  ;;  %v1706_v13 = vld [vmem:[#allocation8 + $0x110] sm:$0xff]   ;;  %v1709_v15 = vld [vmem:[#allocation8 + $0x158] sm:$0xff]   ;;  %v1711_v16 = vld [vmem:[#allocation8 + $0xe0] sm:$0xff]  }
  0x84   :  { %1481 = vmatprep.subr.bf16.mxu0 %v1677_v20  ;;  %v194_v55 = vrot.slane %v180_v48, %v2075_v36  ;;  %v187_v56 = vrot.slane %v179_v49, %v2075_v36  ;;  %v533_v3 = vrot.slane %v510_v62, %v2075_v36  ;;  %v2093_v4 = vrot.slane %v509_v63, %v2075_v36  ;;  %v1710_v17 = vld [vmem:[#allocation8 + $0x118] sm:$0xff]   ;;  %v1712_v18 = vld [vmem:[#allocation8 + $0xa0] sm:$0xff]   ;;  %v1715_v20 = vld [vmem:[#allocation8 + $0xe8] sm:$0xff]  }
  0x85   :  { %1502 = vmatpush3.bf16.msra.mxu1 %v1676_v19  ;;  %v2096_v9 = vrot.slane %v512_v2, %v2075_v36  ;;  %v1713_v19 = vld [vmem:[#allocation8 + $0x160] sm:$0xff]   ;;  %v1717_v23 = vld [vmem:[#allocation8 + $0x168] sm:$0xff]   ;;  %v1719_v24 = vld [vmem:[#allocation8 + $0xf0] sm:$0xff]  }
  0x86   :  { %1503 = vmatprep.subr.bf16.mxu1 %v1679_v22  ;;  %325 = vmatprep.mubr.bf16.mxu0 %v194_v55  ;;  %v543_v7 = vcombine.high %v533_v3, %v533_v3  ;;  %v1716_v22 = vld [vmem:[#allocation8 + $0xa8] sm:$0xff]   ;;  %v1724_v30 = vld [vmem:[#allocation8 + $0xb8] sm:$0xff]   ;;  %v1728_v37 = vld [vmem:[#allocation8 + $0x180] sm:$0xff]  }
  0x87   :  { %1482 = vmatpush3.bf16.msra.mxu0 %v1678_v21  ;;  %969 = vmatprep.mubr.bf16.mxu1 %v533_v3  ;;  %v1714_v21 = vld [vmem:[#allocation8 + $0x120] sm:$0xff]   ;;  %v1718_v25 = vld [vmem:[#allocation8 + $0x128] sm:$0xff]   ;;  %v1725_v31 = vld [vmem:[#allocation8 + $0x178] sm:$0xff]   ;;  %v544_v39 = vcombine.high %v2096_v9, %v2096_v9 }
  0x88   :  { %1483 = vmatprep.subr.bf16.mxu0 %v1681_v27  ;;  %v1721_v27 = vld [vmem:[#allocation8 + $0x170] sm:$0xff]   ;;  %v1729_v38 = vld [vmem:[#allocation8 + $0x1c8] sm:$0xff]   ;;  %v1734_v46 = vld [vmem:[#allocation8 + $0x198] sm:$0xff]  }
  0x89   :  { %1504 = vmatpush3.bf16.msra.mxu1 %v1680_v26  ;;  %v1720_v26 = vld [vmem:[#allocation8 + $0xb0] sm:$0xff]   ;;  %v1730_v41 = vld [vmem:[#allocation8 + $0x188] sm:$0xff]   ;;  %v1735_v47 = vld [vmem:[#allocation8 + $0x1e0] sm:$0xff]  }
  0x8a   :  { %1505 = vmatprep.subr.bf16.mxu1 %v1683_v29  ;;  %v1722_v29 = vld [vmem:[#allocation8 + $0x130] sm:$0xff]   ;;  %v1736_v48 = vld [vmem:[#allocation8 + $0x1a0] sm:$0xff]   ;;  %v1737_v49 = vld [vmem:[#allocation8 + $0x1e8] sm:$0xff]  }
  0x8b   :  { %1484 = vmatpush3.bf16.msra.mxu0 %v1682_v28  ;;  %v1723_v28 = vld [vmem:[#allocation8 + $0xf8] sm:$0xff]   ;;  %v1731_v42 = vld [vmem:[#allocation8 + $0x1d0] sm:$0xff]   ;;  %v1738_v50 = vld [vmem:[#allocation8 + $0x1a8] sm:$0xff]  }
  0x8c   :  { %1485 = vmatprep.subr.bf16.mxu0 %v1685_v33  ;;  %v541_v33 = vcombine.high %v2093_v4, %v2093_v4  ;;  %v1732_v44 = vld [vmem:[#allocation8 + $0x190] sm:$0xff]   ;;  %v1741_v53 = vld [vmem:[#allocation8 + $0x1f8] sm:$0xff]  }
  0x8d   :  { %1506 = vmatpush3.bf16.msra.mxu1 %v1684_v32  ;;  %v1727_v32 = vld [vmem:[#allocation8 + $0x1c0] sm:$0xff]   ;;  %v1739_v51 = vld [vmem:[#allocation8 + $0x1f0] sm:$0xff]   ;;  %v1750_v63 = vld [vmem:[#allocation10 + $0x38] sm:$0xff]  }
  0x8e   :  { %1507 = vmatprep.subr.bf16.mxu1 %v1687_v35  ;;  %v511_v35 = vcombine.low %v2084_v59, %v2087_v61  ;;  %v1740_v52 = vld [vmem:[#allocation8 + $0x1b0] sm:$0xff]   ;;  %v1746_v59 = vld [vmem:[#allocation10 + $0x18] sm:$0xff]   ;;  %v1748_v61 = vld [vmem:[#allocation10 + $0x28] sm:$0xff]  }
  0x8f   :  { %1486 = vmatpush3.bf16.msra.mxu0 %v1686_v34  ;;  %v1726_v34 = vld [vmem:[#allocation8 + $0x138] sm:$0xff]   ;;  %v1745_v58 = vld [vmem:[#allocation10 + $0x10] sm:$0xff]  }
  0x90   :  { %1515 = vmatprep.subr.bf16.mxu0 %v1689_v45  ;;  %v526_v40 = vrot.slane %v511_v35, %v2075_v36  ;;  %v1733_v45 = vld [vmem:[#allocation8 + $0x1d8] sm:$0xff]   ;;  %v1749_v62 = vld [vmem:[#allocation10 + $0x30] sm:$0xff]  }
  0x91   :  { %1508 = vmatpush3.bf16.msra.mxu1 %v1688_v43  ;;  %v1936_v43 = vmov 0.0   ;;  %v1753_v2 = vld [vmem:[#allocation11 + $0x10] sm:$0xff]   ;;  %v1754_v3 = vld [vmem:[#allocation11 + $0x18] sm:$0xff]  }
  0x92   :  { %1537 = vmatprep.subr.bf16.mxu1 %v1697_v54  ;;  %326 = vmatmul.mubr.bf16.vlgmr.msra.gmra.mrb[0].mxu0 %v187_v56  ;;  %v1742_v54 = vld [vmem:[#allocation8 + $0x1b8] sm:$0xff]   ;;  %v542_v55 = vcombine.high %v526_v40, %v526_v40  ;;  %v1743_v56 = vld [vmem:[#allocation10] sm:$0xff]  }
  0x93   :  { %1516 = vmatpush3.bf16.msra.mxu0 %v1690_v57  ;;  %1009 = vmatprep.mubr.bf16.mxu0 %v543_v7  ;;  %v1744_v57 = vld [vmem:[#allocation10 + $0x8] sm:$0xff]   ;;  %v1758_v7 = vld [vmem:[#allocation11 + $0x38] sm:$0xff]  }
  0x94   :  { %1517 = vmatprep.subr.bf16.mxu0 %v1699_v60  ;;  %970 = vmatmul.mubr.bf16.vlgmr.msra.gmra.mrb[0].mxu1 %v2093_v4  ;;  %v1747_v60 = vld [vmem:[#allocation10 + $0x20] sm:$0xff]  }
  0x95   :  { %1538 = vmatpush3.bf16.msra.mxu1 %v1698_v0  ;;  %1049 = vmatprep.mubr.bf16.mxu1 %v2096_v9  ;;  %v1751_v0 = vld [vmem:[#allocation11] sm:$0xff]   ;;  %v1370_v9 = vld [vmem:[%s2152_s3] ss:$0 sm:$0xff] }
  0x96   :  { %1539 = vmatprep.subr.bf16.mxu1 %v1701_v5  ;;  %v1755_v4 = vld [vmem:[#allocation11 + $0x20] sm:$0xff]   ;;  %v1756_v5 = vld [vmem:[#allocation11 + $0x28] sm:$0xff]  }
  0x97   :  { %1518 = vmatpush3.bf16.msra.mxu0 %v1700_v1  ;;  %v1752_v1 = vld [vmem:[#allocation11 + $0x8] sm:$0xff]  }
  0x98   :  { %1519 = vmatprep.subr.bf16.mxu0 %v1703_v6  ;;  %v1757_v6 = vld [vmem:[#allocation11 + $0x30] sm:$0xff]  }
  0x99   :  { %1540 = vmatpush3.bf16.msra.mxu1 %v1702_v8 }
  0x9a   :  { %1541 = vmatprep.subr.bf16.mxu1 %v1705_v11 }
  0x9b   :  { %1520 = vmatpush3.bf16.msra.mxu0 %v1704_v10 }
  0x9c   :  { %1521 = vmatprep.subr.bf16.mxu0 %v1707_v12 }
  0x9d   :  { %1542 = vmatpush3.bf16.msra.mxu1 %v1706_v13 }
  0x9e   :  { %1543 = vmatprep.subr.bf16.mxu1 %v1709_v15 }
  0x9f   :  { %1522 = vmatpush3.bf16.msra.mxu0 %v1708_v14 }
  0xa0   :  { %1523 = vmatprep.subr.bf16.mxu0 %v1711_v16 }
  0xa1   :  { %1544 = vmatpush3.bf16.msra.mxu1 %v1710_v17 }
  0xa2   :  { %1545 = vmatprep.subr.bf16.mxu1 %v1713_v19 }
  0xa3   :  { %1524 = vmatpush3.bf16.msra.mxu0 %v1712_v18 }
  0xa4   :  { %1525 = vmatprep.subr.bf16.mxu0 %v1715_v20 }
  0xa5   :  { %1546 = vmatpush3.bf16.msra.mxu1 %v1714_v21 }
  0xa6   :  { %1547 = vmatprep.subr.bf16.mxu1 %v1717_v23 }
  0xa7   :  { %1526 = vmatpush3.bf16.msra.mxu0 %v1716_v22  ;;  %v1387_v22 = vld [vmem:[%s2154_s5] ss:$0 sm:$0xff] }
  0xa8   :  { %1527 = vmatprep.subr.bf16.mxu0 %v1719_v24 }
  0xa9   :  { %1548 = vmatpush3.bf16.msra.mxu1 %v1718_v25 }
  0xaa   :  { %1549 = vmatprep.subr.bf16.mxu1 %v1721_v27 }
  0xab   :  { %1528 = vmatpush3.bf16.msra.mxu0 %v1720_v26 }
  0xac   :  { %1529 = vmatprep.subr.bf16.mxu0 %v1723_v28 }
  0xad   :  { %1550 = vmatpush3.bf16.msra.mxu1 %v1722_v29 }
  0xae   :  { %1551 = vmatprep.subr.bf16.mxu1 %v1725_v31 }
  0xaf   :  { %1530 = vmatpush3.bf16.msra.mxu0 %v1724_v30 }
  0xb0   :  { %1559 = vmatprep.subr.bf16.mxu0 %v1727_v32 }
  0xb1   :  { %1552 = vmatpush3.bf16.msra.mxu1 %v1726_v34 }
  0xb2   :  { %1010 = vmatmul.mubr.bf16.vlgmr.msra.gmra.mrb[4].mxu0 %v541_v33  ;;  %1599 = vmatprep.subr.bf16.mxu1 %v1936_v43 }
  0xb3   :  { %1560 = vmatpush3.bf16.msra.mxu0 %v1728_v37  ;;  %1089 = vmatprep.mubr.bf16.mxu0 %v544_v39 }
  0xb4   :  { %1561 = vmatprep.subr.bf16.mxu0 %v1729_v38  ;;  %1050 = vmatmul.mubr.bf16.vlgmr.msra.gmra.mrb[4].mxu1 %v526_v40 }
  0xb5   :  { %1615 = vmatprep.mubr.msk.bf16.mxu1 %vm1937_vm0, %v1936_v43  ;;  %1600 = vmatpush3.bf16.msra.mxu1 %v1751_v0 }
  0xb6   :  { %1601 = vmatprep.subr.bf16.mxu1 %v1936_v43 }
  0xb7   :  { %1562 = vmatpush3.bf16.msra.mxu0 %v1730_v41 }
  0xb8   :  { %1563 = vmatprep.subr.bf16.mxu0 %v1731_v42 }
  0xb9   :  { %1602 = vmatpush3.bf16.msra.mxu1 %v1752_v1 }
  0xba   :  { %1603 = vmatprep.subr.bf16.mxu1 %v1936_v43 }
  0xbb   :  { %1564 = vmatpush3.bf16.msra.mxu0 %v1732_v44 }
  0xbc   :  { %1565 = vmatprep.subr.bf16.mxu0 %v1733_v45 }
  0xbd   :  { %1604 = vmatpush3.bf16.msra.mxu1 %v1753_v2 }
  0xbe   :  { %1605 = vmatprep.subr.bf16.mxu1 %v1936_v43 }
  0xbf   :  { %1566 = vmatpush3.bf16.msra.mxu0 %v1734_v46 }
  0xc0   :  { %1567 = vmatprep.subr.bf16.mxu0 %v1735_v47 }
  0xc1   :  { %1606 = vmatpush3.bf16.msra.mxu1 %v1754_v3 }
  0xc2   :  { %1607 = vmatprep.subr.bf16.mxu1 %v1936_v43 }
  0xc3   :  { %1568 = vmatpush3.bf16.msra.mxu0 %v1736_v48 }
  0xc4   :  { %1569 = vmatprep.subr.bf16.mxu0 %v1737_v49 }
  0xc5   :  { %1608 = vmatpush3.bf16.msra.mxu1 %v1755_v4 }
  0xc6   :  { %1609 = vmatprep.subr.bf16.mxu1 %v1936_v43 }
  0xc7   :  { %1570 = vmatpush3.bf16.msra.mxu0 %v1738_v50  ;;  %v1468_v50 = vld [vmem:[%s2157_s8] ss:$0 sm:$0xff] }
  0xc8   :  { %1571 = vmatprep.subr.bf16.mxu0 %v1739_v51 }
  0xc9   :  { %1610 = vmatpush3.bf16.msra.mxu1 %v1756_v5 }
  0xca   :  { %1611 = vmatprep.subr.bf16.mxu1 %v1936_v43 }
  0xcb   :  { %1572 = vmatpush3.bf16.msra.mxu0 %v1740_v52 }
  0xcc   :  { %1573 = vmatprep.subr.bf16.mxu0 %v1741_v53 }
  0xcd   :  { %1612 = vmatpush3.bf16.msra.mxu1 %v1757_v6 }
  0xce   :  { %1613 = vmatprep.subr.bf16.mxu1 %v1936_v43 }
  0xcf   :  { %1574 = vmatpush3.bf16.msra.mxu0 %v1742_v54 }
  0xd0   :  { %1619 = vmatprep.subr.bf16.mxu0 %v1936_v43 }
  0xd1   :  { %1614 = vmatpush3.bf16.msra.mxu1 %v1758_v7 }
  0xd2   :  { %1090 = vmatmul.mubr.bf16.vlgmr.msra.gmra.mrb[8].mxu0 %v542_v55 }
  0xd3   :  { %1620 = vmatpush3.bf16.msra.mxu0 %v1743_v56  ;;  %1635 = vmatprep.mubr.msk.bf16.mxu0 %vm1937_vm0, %v1936_v43 }
  0xd4   :  { %1621 = vmatprep.subr.bf16.mxu0 %v1936_v43 }
  0xd7   :  { %1622 = vmatpush3.bf16.msra.mxu0 %v1744_v57 }
  0xd8   :  { %1623 = vmatprep.subr.bf16.mxu0 %v1936_v43 }
  0xdb   :  { %1624 = vmatpush3.bf16.msra.mxu0 %v1745_v58 }
  0xdc   :  { %1625 = vmatprep.subr.bf16.mxu0 %v1936_v43 }
  0xdf   :  { %1626 = vmatpush3.bf16.msra.mxu0 %v1746_v59 }
  0xe0   :  { %1627 = vmatprep.subr.bf16.mxu0 %v1936_v43 }
  0xe3   :  { %1628 = vmatpush3.bf16.msra.mxu0 %v1747_v60 }
  0xe4   :  { %1629 = vmatprep.subr.bf16.mxu0 %v1936_v43 }
  0xe7   :  { %1630 = vmatpush3.bf16.msra.mxu0 %v1748_v61 }
  0xe8   :  { %1631 = vmatprep.subr.bf16.mxu0 %v1936_v43 }
  0xeb   :  { %1632 = vmatpush3.bf16.msra.mxu0 %v1749_v62 }
  0xec   :  { %1633 = vmatprep.subr.bf16.mxu0 %v1936_v43 }
  0xef   :  { %1634 = vmatpush3.bf16.msra.mxu0 %v1750_v63 }
 0x165   :  { %v1487_v8 = vpop.f32.mrb[0].mxu0 }
 0x166   :  { %v1488_v10 = vpop.f32.mrb[1].mxu0 }
 0x167   :  { %v1489_v11 = vadd.f32 %v1488_v10, %v1487_v8  ;;  %v1490_v12 = vpop.f32.mrb[2].mxu0  ;;  %v1509_v15 = vpop.f32.mrb[0].mxu1 }
 0x168   :  { %v1491_v13 = vpop.f32.mrb[3].mxu0  ;;  %v1510_v16 = vpop.f32.mrb[1].mxu1 }
 0x169   :  { %v328_v14 = vadd.f32 %v1489_v11, %v1370_v9  ;;  %v1511_v18 = vadd.f32 %v1510_v16, %v1509_v15  ;;  %v1512_v19 = vpop.f32.mrb[2].mxu1 }
 0x16a   :  { %v1513_v20 = vpop.f32.mrb[3].mxu1 }
 0x16b   :  { %v333_v17 = vmax.f32 %v328_v14, 0.0  ;;  %v972_v23 = vadd.f32 %v1511_v18, %v1387_v22 }
 0x16d   :  { %v1098_v21 = vpack.c.bf16 %v333_v17, %v333_v17 }
 0x16f   :  { %1636 = vmatmul.mubr.bf16.vlgmr.msra.gmra.mrb[12].mxu0 %v1098_v21 }
 0x185   :  { %v1531_v24 = vpop.f32.mrb[4].mxu0 }
 0x186   :  { %v1532_v25 = vpop.f32.mrb[5].mxu0 }
 0x187   :  { %v1533_v26 = vadd.f32 %v1532_v25, %v1531_v24  ;;  %v1534_v27 = vpop.f32.mrb[6].mxu0  ;;  %v1553_v30 = vpop.f32.mrb[4].mxu1 }
 0x188   :  { %v1535_v28 = vpop.f32.mrb[7].mxu0  ;;  %v1554_v31 = vpop.f32.mrb[5].mxu1 }
 0x189   :  { %v1012_v29 = vadd.f32 %v1533_v26, %v972_v23  ;;  %v1555_v32 = vadd.f32 %v1554_v31, %v1553_v30  ;;  %v1556_v33 = vpop.f32.mrb[6].mxu1 }
 0x18a   :  { %v1557_v34 = vpop.f32.mrb[7].mxu1 }
 0x18b   :  { %v1052_v35 = vadd.f32 %v1555_v32, %v1012_v29 }
 0x1a5   :  { %v1575_v37 = vpop.f32.mrb[8].mxu0 }
 0x1a6   :  { %v1576_v38 = vpop.f32.mrb[9].mxu0 }
 0x1a7   :  { %v1577_v39 = vadd.f32 %v1576_v38, %v1575_v37  ;;  %v1578_v40 = vpop.f32.mrb[10].mxu0 }
 0x1a8   :  { %v1579_v41 = vpop.f32.mrb[11].mxu0 }
 0x1a9   :  { %v1092_v42 = vadd.f32 %v1577_v39, %v1052_v35 }
 0x1ab   :  { %v1097_v43 = vmax.f32 %v1092_v42, 0.0 }
 0x1ad   :  { %v1115_v44 = vpack.c.bf16 %v1097_v43, %v1097_v43 }
 0x1af   :  { %1616 = vmatmul.mubr.bf16.vlgmr.msra.gmra.mrb[8].mxu1 %v1115_v44 }
 0x242   :  { %v1302_v45 = vpop.f32.mrb[12].mxu0 }
 0x243   :  { %v1637_v46 = vpop.f32.mrb[13].mxu0 }
 0x244   :  { %v1305_v47 = vpop.f32.mrb[14].mxu0 }
 0x245   :  { %v1638_v48 = vpop.f32.mrb[15].mxu0 }
 0x282   :  { %v1214_v49 = vpop.f32.mrb[8].mxu1 }
 0x283   :  { %v1303_v51 = vadd.f32 %v1302_v45, %v1214_v49  ;;  %v1617_v52 = vpop.f32.mrb[9].mxu1 }
 0x284   :  { %v1217_v53 = vpop.f32.mrb[10].mxu1 }
 0x285   :  { %v1315_v54 = vadd.f32 %v1468_v50, %v1303_v51  ;;  %v1618_v55 = vpop.f32.mrb[11].mxu1 }
 0x287   :  { %v1316_v56 = vpack.c.bf16 %v1315_v54, %v1315_v54 }
 0x289   :  { %v1324_v57 = vrot.slane %v1316_v56, %v2075_v36 }
 0x28b   :  { %v1325_v58 = vcombine.high %v1324_v57, %v1324_v57  ;;  %v1332_v59 = vrot.slane %v1324_v57, %v2075_v36  ;;  %1469 = vst.sshfl [vmem:[#allocation13] sm:$0x1 pattern:$0x73625140] %v1324_v57 }
 0x28d   :  { %v1339_v60 = vrot.slane %v1325_v58, %v2075_v36  ;;  %v1340_v61 = vcombine.high %v1332_v59, %v1332_v59  ;;  %1470 = vst.sshfl [vmem:[#allocation13 + $0x1] sm:$0x1 pattern:$0x73625140] %v1325_v58 }
 0x28f   :  { %v1341_v62 = vcombine.high %v1339_v60, %v1339_v60  ;;  %1348 = vst [vmem:[#allocation13 + $0x2] sm:$0x1] %v1340_v61 }
 0x291   :  { %1349 = vst [vmem:[#allocation13 + $0x3] sm:$0x1] %v1341_v62 }
 0x292   :  { %1354 = vsyncadd [#allocation4], 48  ;;  %s1938_s8 = smov [#allocation13]  }
 0x293   :  { %s1355_s21 = sshll.u32 %s1938_s8, 4  ;;  %s1356_s21 = int_to_ptr.vmem [resolvable:$true] %s1355_s21 }
 0x294   :  { %s1891_s22 = scalar_lea.vmem %s1356_s21, 16  ;;  %s1895_s23 = scalar_lea.vmem %s1356_s21, 64 }
 0x295   :  { %p1892_p6 = scmp.ne.s32.totalorder %s1356_s21, %s1891_s22  ;;  %p1896_p7 = scmp.lt.s32.totalorder %s1356_s21, %s1356_s21 }
 0x296   :  { %p1897_p8 = scmp.lt.s32.totalorder %s1895_s23, %s1891_s22 }
 0x298   :  { %p1898_p9 = por %p1897_p8, %p1896_p7 }
 0x29a   :  { %p1899_p10 = pnand %p1898_p9, %p1892_p6 }
 0x29c   :  { %1902 = shalt.err (!%p1899_p10)
}
 0x29d   :  { %s1903_s27 = scalar_lea.hbm %s2158_s9, 16 }
 0x29e   :  { %p1904_p11 = scmp.ne.s32.totalorder %s2158_s9, %s1903_s27  ;;  %p1907_p12 = scmp.lt.u32.totalorder %s1903_s27, %s2158_s9 }
 0x2a0   :  { %p1909_p13 = pnand %p1907_p12, %p1904_p11 }
 0x2a2   :  { %1912 = shalt.err (!%p1909_p13)
}
 0x2a3   :  { %s1939_s2 = smov 16   ;;  %s1940_s20 = smov 1  }
 0x2a4   :  { %1361 = dma.vmem_to_hbm [thread:$0]  %s1356_s21, 16, %s2158_s9, [#allocation4], %s1939_s2, %s1939_s2, %s1940_s20  }
 0x2a5   :  { %1921 = dma.done.wait [#allocation4], 64  }
 0x2a6   :  { %1922 = vsyncadd [#allocation4], 4294967232 }
 0x2a7   :  { %1365 = vsyncpa [#allocation3], 1 }
 0x2a8   :  { %1366 = vsyncpa [#allocation6], 1 }
 0x2a9   :  { %1367 = vsyncpa [#allocation9], 1 }
 0x2aa   :  { %1368 = vsyncpa [#allocation12], 1 }
 0x2ab   :  { %1369 = vsyncpa [#allocation4], 1 }

</bundles_post_ra>
